<compile_context>
chip_gen: v6e
topology: v6e:2x2x1
jax: 0.10.0
libtpu: 0.0.40
codegen_flags: <defaults>
</compile_context>

<pallas_src>
import functools

import jax
import jax.numpy as jnp
from jax import lax
from jax.experimental import pallas as pl
from jax.experimental.pallas import tpu as pltpu

BN_EPS = 1e-5
_MATMUL_TILE_TARGET_BYTES = 4 * 1024 * 1024     # HBM traffic per grid step (passes 1-2)
_EW_TILE_TARGET_BYTES = 16 * 1024 * 1024        # HBM traffic per grid step (pass 3)
_SINGLE_BUFFER_WEIGHT_BYTES = 4 * 1024 * 1024   # single-buffer resident weights above this
_MAX_TILE_N = 4096
_MIN_TILE_N = 256


def _cdiv(a, b):
    return -(-a // b)


def _round_up(a, b):
    return _cdiv(a, b) * b


def _sublane(dtype):
    # 8 rows for 32-bit, 16 for bf16, 32 for int8 (sublane packing).
    return max(8, 32 // max(jnp.dtype(dtype).itemsize, 1))


def _vmem_limit_bytes():
    """Generation-aware VMEM budget (v5e/v6e: 128 MiB, v7x: 64 MiB)."""
    try:
        cap = getattr(pltpu.get_tpu_info(), "vmem_capacity_bytes", None)
        if cap:
            return int(cap) * 3 // 4
    except Exception:
        pass
    return 48 * 1024 * 1024


def _num_tensorcores():
    """Best-effort TensorCores-per-chip query (v7x: 2); defaults to 1."""
    try:
        info = pltpu.get_tpu_info()
        for name in ("num_tensorcores", "tensorcores_per_chip",
                     "tensor_cores_per_chip", "num_cores", "cores_per_chip"):
            v = getattr(info, name, None)
            if v:
                return max(1, min(int(v), 4))
    except Exception:
        pass
    return 1


def _pad_cast(a, shape, dtype, fill=0.0):
    """Cast/zero-pad `a` to (shape, dtype); no copy if already aligned."""
    dtype = jnp.dtype(dtype)
    if a.dtype != dtype:
        a = a.astype(dtype)
    if a.shape == tuple(shape):
        return a
    out = jnp.full(shape, fill, dtype)
    return out.at[tuple(slice(0, s) for s in a.shape)].set(a)


def _resident_spec(shape, single_buffer):
    """BlockSpec for a grid-invariant operand of the 2-D (shard, tile) grid."""
    index_map = lambda c, i: (0,) * len(shape)
    if single_buffer:
        # Large weights never change across the grid: don't double-buffer them
        # (matters on v7x where VMEM is 64 MiB).
        return pl.BlockSpec(shape, index_map, pipeline_mode=pl.Buffered(1))
    return pl.BlockSpec(shape, index_map)


# --------------------------------------------------------------------------
# Kernel 1: h = x @ W0, accumulate per-feature sum / sum-of-squares of h.
# --------------------------------------------------------------------------
def _linear_stats_kernel(x_ref, w_ref, h_ref, sum_ref, ssq_ref):
    @pl.when(pl.program_id(1) == 0)
    def _():
        sum_ref[...] = jnp.zeros_like(sum_ref)
        ssq_ref[...] = jnp.zeros_like(ssq_ref)

    h = jnp.dot(x_ref[...], w_ref[...], preferred_element_type=jnp.float32)
    # (1, F) tile sums broadcast-added into the resident (8, F) accumulator:
    # every sublane row ends up holding the same total (unmasked stores).
    sum_ref[...] += jnp.sum(h, axis=0, keepdims=True)
    ssq_ref[...] += jnp.sum(h * h, axis=0, keepdims=True)
    h_ref[...] = h.astype(h_ref.dtype)


def _linear_stats(x, w, tile_n, shards, tiles_per_shard, act_dtype, vmem_limit):
    n_pad, f_in = x.shape
    f_out = w.shape[1]
    single_w = f_in * f_out * w.dtype.itemsize >= _SINGLE_BUFFER_WEIGHT_BYTES
    act_bytes = jnp.dtype(act_dtype).itemsize
    row_map = lambda c, i: (c * tiles_per_shard + i, 0)
    stat_map = lambda c, i: (c, 0)
    cost = pl.CostEstimate(
        flops=2 * n_pad * f_in * f_out,
        transcendentals=0,
        bytes_accessed=(n_pad * f_in * x.dtype.itemsize
                        + f_in * f_out * w.dtype.itemsize
                        + n_pad * f_out * act_bytes
                        + 2 * shards * 8 * f_out * 4),
    )
    return pl.pallas_call(
        _linear_stats_kernel,
        grid=(shards, tiles_per_shard),
        in_specs=[
            pl.BlockSpec((tile_n, f_in), row_map),
            _resident_spec((f_in, f_out), single_w),
        ],
        out_specs=[
            pl.BlockSpec((tile_n, f_out), row_map),
            pl.BlockSpec((8, f_out), stat_map),
            pl.BlockSpec((8, f_out), stat_map),
        ],
        out_shape=(
            jax.ShapeDtypeStruct((n_pad, f_out), act_dtype),
            jax.ShapeDtypeStruct((shards * 8, f_out), jnp.float32),
            jax.ShapeDtypeStruct((shards * 8, f_out), jnp.float32),
        ),
        compiler_params=pltpu.CompilerParams(
            dimension_semantics=("parallel", "arbitrary"),
            vmem_limit_bytes=vmem_limit,
        ),
        cost_estimate=cost,
    )(x, w)


# --------------------------------------------------------------------------
# Kernel 2: a = relu(h*scale0 + shift0); y = a @ W1; accumulate stats of y.
# Padded batch rows (h == 0) produce a constant a == relu(shift0) row; their
# contribution to the statistics is removed analytically in the wrapper, so
# no per-tile row mask is needed here.
# --------------------------------------------------------------------------
def _bn_relu_linear_stats_kernel(scale_ref, shift_ref, h_ref, w_ref,
                                 y_ref, sum_ref, ssq_ref):
    @pl.when(pl.program_id(1) == 0)
    def _():
        sum_ref[...] = jnp.zeros_like(sum_ref)
        ssq_ref[...] = jnp.zeros_like(ssq_ref)

    h = h_ref[...].astype(jnp.float32)
    a = jnp.maximum(h * scale_ref[...] + shift_ref[...], 0.0)
    y = jnp.dot(a.astype(w_ref.dtype), w_ref[...],
                preferred_element_type=jnp.float32)
    sum_ref[...] += jnp.sum(y, axis=0, keepdims=True)
    ssq_ref[...] += jnp.sum(y * y, axis=0, keepdims=True)
    y_ref[...] = y.astype(y_ref.dtype)


def _bn_relu_linear_stats(h, w, scale, shift, tile_n, shards, tiles_per_shard,
                          act_dtype, vmem_limit):
    n_pad, f_in = h.shape
    f_out = w.shape[1]
    single_w = f_in * f_out * w.dtype.itemsize >= _SINGLE_BUFFER_WEIGHT_BYTES
    act_bytes = jnp.dtype(act_dtype).itemsize
    row_map = lambda c, i: (c * tiles_per_shard + i, 0)
    stat_map = lambda c, i: (c, 0)
    vec_map = lambda c, i: (0, 0)
    cost = pl.CostEstimate(
        flops=2 * n_pad * f_in * f_out + 4 * n_pad * f_in,
        transcendentals=0,
        bytes_accessed=(n_pad * f_in * h.dtype.itemsize
                        + f_in * f_out * w.dtype.itemsize
                        + 2 * f_in * 4
                        + n_pad * f_out * act_bytes
                        + 2 * shards * 8 * f_out * 4),
    )
    return pl.pallas_call(
        _bn_relu_linear_stats_kernel,
        grid=(shards, tiles_per_shard),
        in_specs=[
            pl.BlockSpec((1, f_in), vec_map),            # scale0 (resident)
            pl.BlockSpec((1, f_in), vec_map),            # shift0 (resident)
            pl.BlockSpec((tile_n, f_in), row_map),
            _resident_spec((f_in, f_out), single_w),
        ],
        out_specs=[
            pl.BlockSpec((tile_n, f_out), row_map),
            pl.BlockSpec((8, f_out), stat_map),
            pl.BlockSpec((8, f_out), stat_map),
        ],
        out_shape=(
            jax.ShapeDtypeStruct((n_pad, f_out), act_dtype),
            jax.ShapeDtypeStruct((shards * 8, f_out), jnp.float32),
            jax.ShapeDtypeStruct((shards * 8, f_out), jnp.float32),
        ),
        compiler_params=pltpu.CompilerParams(
            dimension_semantics=("parallel", "arbitrary"),
            vmem_limit_bytes=vmem_limit,
        ),
        cost_estimate=cost,
    )(scale, shift, h, w)


# --------------------------------------------------------------------------
# Kernel 3: out = relu(y*scale1 + shift1).  Pure elementwise -> big tiles,
# "parallel" grid, and y aliased to the output when the dtypes match.
# --------------------------------------------------------------------------
def _bn_relu_kernel(scale_ref, shift_ref, y_ref, o_ref):
    y = y_ref[...].astype(jnp.float32)
    o_ref[...] = jnp.maximum(y * scale_ref[...] + shift_ref[...], 0.0).astype(o_ref.dtype)


def _bn_relu(y, scale, shift, tile_n, out_dtype, vmem_limit):
    n_pad, f = y.shape
    out_dtype = jnp.dtype(out_dtype)
    aliases = {2: 0} if out_dtype == y.dtype else {}
    cost = pl.CostEstimate(
        flops=3 * n_pad * f,
        transcendentals=0,
        bytes_accessed=n_pad * f * (y.dtype.itemsize + out_dtype.itemsize) + 2 * f * 4,
    )
    return pl.pallas_call(
        _bn_relu_kernel,
        grid=(n_pad // tile_n,),
        in_specs=[
            pl.BlockSpec((1, f), lambda i: (0, 0)),
            pl.BlockSpec((1, f), lambda i: (0, 0)),
            pl.BlockSpec((tile_n, f), lambda i: (i, 0)),
        ],
        out_specs=pl.BlockSpec((tile_n, f), lambda i: (i, 0)),
        out_shape=jax.ShapeDtypeStruct((n_pad, f), out_dtype),
        compiler_params=pltpu.CompilerParams(
            dimension_semantics=("parallel",),
            vmem_limit_bytes=vmem_limit,
        ),
        input_output_aliases=aliases,
        cost_estimate=cost,
    )(scale, shift, y)


# --------------------------------------------------------------------------
# Tiling / BN folding helpers.
# --------------------------------------------------------------------------
def _choose_tile_n(n, row_bytes, weight_bytes, sub, vmem_limit, tile_n=None):
    if tile_n is None:
        t = _MATMUL_TILE_TARGET_BYTES // max(row_bytes, 1)
        t = max(min(t, _MAX_TILE_N), _MIN_TILE_N)
    else:
        t = tile_n
    t = _round_up(max(t, sub), sub)
    # Resident weight (x2 when double-buffered) + double-buffered in/out tiles.
    w_mult = 1 if weight_bytes >= _SINGLE_BUFFER_WEIGHT_BYTES else 2
    budget = int(vmem_limit * 0.85)
    while t > sub and w_mult * weight_bytes + 2 * t * row_bytes > budget:
        t = _round_up(t // 2, sub)
    t = min(t, _round_up(n, sub))
    return max(t, sub)


def _choose_tile_ew(tile_n, n_tiles, row_bytes, vmem_limit):
    """Largest multiple of tile_n that divides n_tiles and fits the byte target."""
    target = min(_EW_TILE_TARGET_BYTES, int(vmem_limit * 0.2))
    best = 1
    for m in range(1, n_tiles + 1):
        if n_tiles % m == 0 and m * tile_n * row_bytes <= target:
            best = m
    return tile_n * best


def _reduce_stat(parts, shards, f):
    # Every sublane row of a shard's (8, F) block holds the same total.
    return parts.reshape(shards, 8, f)[:, 0, :].sum(axis=0, keepdims=True)


def _fold_bn(s, q, count, gamma, beta, eps):
    """Fold BatchNorm (batch statistics) into per-feature scale/shift (f32)."""
    # TODO(synk): one-pass E[z^2]-mean^2 can cancel catastrophically when
    #             |mean| >> std at very large N; a shifted/Welford accumulation
    #             would be more robust.
    mean = s / count
    var = jnp.maximum(q / count - mean * mean, 0.0)
    scale = gamma * lax.rsqrt(var + eps)
    shift = beta - mean * scale
    return scale, shift


# --------------------------------------------------------------------------
# Public wrapper: full MLP forward.
# --------------------------------------------------------------------------
def mlp_forward(x, w0_t, g0, b0, w1_t, g1, b1, *, eps=BN_EPS,
                compute_dtype=None, out_dtype=None, tile_n=None, num_cores=None):
    """x: (N, nin); w0_t: (nin, nhid); w1_t: (nhid, nout); g*/b*: BN affine."""
    n, nin = x.shape
    nhid = w0_t.shape[1]
    nout = w1_t.shape[1]
    assert w0_t.shape[0] == nin and w1_t.shape[0] == nhid

    # bf16 MXU operands + bf16 intermediates for f32 inputs (faster MXU, half
    # the intermediate HBM traffic); BN statistics / normalization stay in f32.
    if compute_dtype is None:
        compute_dtype = jnp.bfloat16 if x.dtype == jnp.float32 else x.dtype
    compute_dtype = jnp.dtype(compute_dtype)
    out_dtype = jnp.dtype(out_dtype) if out_dtype is not None else x.dtype

    f0 = _round_up(nin, 128)
    f1 = _round_up(nhid, 128)
    f2 = _round_up(nout, 128)
    csize = compute_dtype.itemsize
    sub = _sublane(compute_dtype)
    vmem_limit = _vmem_limit_bytes()

    # Adaptive batch tile: ~4 MiB of HBM traffic per grid step, shrunk until the
    # resident weights + double-buffered activation tiles fit VMEM.
    row_bytes = max(f0 + f1, f1 + f2) * csize
    weight_bytes = max(f0 * f1, f1 * f2) * csize
    tn = _choose_tile_n(n, row_bytes, weight_bytes, sub, vmem_limit, tile_n)

    # Optional stats sharding across TensorCores (v7x: 2 TCs).  Leading
    # "parallel" grid axis; per-shard partial sums are reduced in plain JAX.
    cores = num_cores if num_cores is not None else _num_tensorcores()
    n_tiles = _cdiv(n, tn)
    shards = cores if (cores > 1 and n_tiles >= 2 * cores) else 1
    n_tiles = _round_up(n_tiles, shards)
    n_pad = n_tiles * tn
    tiles_per_shard = n_tiles // shards

    # Zero-pad / cast only when needed (padding x is a full extra HBM pass).
    xp = _pad_cast(x, (n_pad, f0), compute_dtype)
    w0p = _pad_cast(w0_t, (f0, f1), compute_dtype)
    w1p = _pad_cast(w1_t, (f1, f2), compute_dtype)
    g0p = _pad_cast(jnp.asarray(g0).reshape(1, -1), (1, f1), jnp.float32, fill=1.0)
    b0p = _pad_cast(jnp.asarray(b0).reshape(1, -1), (1, f1), jnp.float32)
    g1p = _pad_cast(jnp.asarray(g1).reshape(1, -1), (1, f2), jnp.float32, fill=1.0)
    b1p = _pad_cast(jnp.asarray(b1).reshape(1, -1), (1, f2), jnp.float32)

    # Layer 0: h = x @ W0  (+ per-feature sum / sum-of-squares of h).
    h, s0p, q0p = _linear_stats(xp, w0p, tn, shards, tiles_per_shard,
                                compute_dtype, vmem_limit)
    scale0, shift0 = _fold_bn(_reduce_stat(s0p, shards, f1),
                              _reduce_stat(q0p, shards, f1),
                              float(n), g0p, b0p, eps)

    # Layer 1: a = relu(BN0(h)); y = a @ W1  (+ stats of y).
    y, s1p, q1p = _bn_relu_linear_stats(h, w1p, scale0, shift0, tn, shards,
                                        tiles_per_shard, compute_dtype, vmem_limit)
    s1 = _reduce_stat(s1p, shards, f2)
    q1 = _reduce_stat(q1p, shards, f2)
    if n_pad > n:
        # Padded batch rows each contribute the same y row (= relu(shift0) @ W1);
        # remove it analytically instead of masking inside the kernel.
        a_pad = jnp.maximum(shift0, 0.0).astype(compute_dtype)
        y_pad = jnp.dot(a_pad, w1p, preferred_element_type=jnp.float32)
        y_pad = y_pad.astype(jnp.float32)
        k = float(n_pad - n)
        s1 = s1 - k * y_pad
        q1 = q1 - k * (y_pad * y_pad)
    scale1, shift1 = _fold_bn(s1, q1, float(n), g1p, b1p, eps)

    # Final BN1 + ReLU (with_final_activation=True).
    tn3 = _choose_tile_ew(tn, n_tiles, f2 * (csize + out_dtype.itemsize), vmem_limit)
    out = _bn_relu(y, scale1, shift1, tn3, out_dtype, vmem_limit)
    return out[:n, :nout]


# --------------------------------------------------------------------------
# Pure-JAX reference (training-mode BatchNorm1d, biased batch variance).
# --------------------------------------------------------------------------
def reference_forward(x, w0_t, g0, b0, w1_t, g1, b1, eps=BN_EPS):
    def bn_relu(z, g, b):
        m = jnp.mean(z, axis=0, keepdims=True)
        v = jnp.mean((z - m) ** 2, axis=0, keepdims=True)
        return jnp.maximum((z - m) / jnp.sqrt(v + eps) * g.reshape(1, -1)
                           + b.reshape(1, -1), 0.0)

    h = bn_relu(x @ w0_t, g0, b0)
    return bn_relu(h @ w1_t, g1, b1)


if __name__ == "__main__":
    key = jax.random.PRNGKey(0)

    def make_params(key, n, nin, nout, dtype=jnp.float32):
        nhid = nin
        kx, kw0, kw1, kg0, kb0, kg1, kb1 = jax.random.split(key, 7)
        x = jax.random.normal(kx, (n, nin), dtype=jnp.float32)
        w0_t = (jax.random.uniform(kw0, (nin, nhid)) - 0.5) * 2.0 / jnp.sqrt(nin)
        w1_t = (jax.random.uniform(kw1, (nhid, nout)) - 0.5) * 2.0 / jnp.sqrt(nhid)
        g0 = 1.0 + 0.1 * jax.random.normal(kg0, (1, nhid))
        b0 = 0.1 * jax.random.normal(kb0, (1, nhid))
        g1 = 1.0 + 0.1 * jax.random.normal(kg1, (1, nout))
        b1 = 0.1 * jax.random.normal(kb1, (1, nout))
        args = (x, w0_t, g0, b0, w1_t, g1, b1)
        return tuple(a.astype(dtype) for a in args)

    def check(args, fwd_kwargs, atol, rtol, name):
        fwd = jax.jit(functools.partial(mlp_forward, **fwd_kwargs))
        out = jax.block_until_ready(fwd(*args))
        ref = reference_forward(*[jnp.asarray(a, jnp.float32) for a in args])
        assert out.shape == ref.shape, name
        ok = jnp.allclose(out.astype(jnp.float32), ref, atol=atol, rtol=rtol)
        assert bool(ok), f"mismatch ({name})"

    k1, k2, k3, k4 = jax.random.split(key, 4)

    # 1) exact f32 compute path, single tile.
    check(make_params(k1, 8, 32, 32),
          dict(compute_dtype=jnp.float32), 2e-4, 2e-4, "f32 single tile")
    # 2) exact f32 path, multi-tile grid + padded batch rows (analytic
    #    layer-1 statistics correction).
    check(make_params(k2, 20, 32, 48),
          dict(compute_dtype=jnp.float32, tile_n=8), 2e-4, 2e-4, "f32 multi tile")
    # 3) default fast path: f32 input -> bf16 MXU operands + bf16 intermediates.
    check(make_params(k3, 24, 48, 64), dict(), 1e-1, 1e-1, "bf16 compute")
    # 4) bf16 end-to-end (exercises the y -> out in-place alias in pass 3).
    check(make_params(k4, 16, 64, 64, dtype=jnp.bfloat16),
          dict(), 1e-1, 1e-1, "bf16 io")

    print("KERNEL_OK")
</pallas_src>

<mosaic_0001>
module attributes {stable_mosaic.version = 11 : i64} {
  func.func @_bn_relu_linear_stats_kernel(%arg0: i32, %arg1: i32, %arg2: memref<1x128xf32, #tpu.memory_space<vmem>>, %arg3: memref<1x128xf32, #tpu.memory_space<vmem>>, %arg4: memref<8x128xf32, #tpu.memory_space<vmem>>, %arg5: memref<128x128xf32, #tpu.memory_space<vmem>>, %arg6: memref<8x128xf32, #tpu.memory_space<vmem>>, %arg7: memref<8x128xf32, #tpu.memory_space<vmem>>, %arg8: memref<8x128xf32, #tpu.memory_space<vmem>>) attributes {dimension_semantics = [#tpu.dimension_semantics<parallel>, #tpu.dimension_semantics<arbitrary>], iteration_bounds = array<i64: 1, 1>, scalar_prefetch = 0 : i64, scratch_operands = 0 : i64, tpu.core_type = #tpu.core_type<tc>, window_params = [{pipeline_mode = #tpu.pipeline_mode<synchronous>, transform_indices = @transform_0, window_bounds = array<i64: 1, 128>}, {pipeline_mode = #tpu.pipeline_mode<synchronous>, transform_indices = @transform_1, window_bounds = array<i64: 1, 128>}, {transform_indices = @transform_2, window_bounds = array<i64: 8, 128>}, {pipeline_mode = #tpu.pipeline_mode<synchronous>, transform_indices = @transform_3, window_bounds = array<i64: 128, 128>}, {transform_indices = @transform_4, window_bounds = array<i64: 8, 128>}, {transform_indices = @transform_5, window_bounds = array<i64: 8, 128>}, {transform_indices = @transform_6, window_bounds = array<i64: 8, 128>}]} {
    %c0_i32 = arith.constant 0 : i32
    %0 = arith.cmpi eq, %arg1, %c0_i32 : i32
    %1 = arith.extui %0 : i1 to i32
    %c0_i32_0 = arith.constant 0 : i32
    %2 = arith.cmpi ne, %1, %c0_i32_0 : i32
    scf.if %2 {
      %cst_21 = arith.constant 0.000000e+00 : f32
      %28 = vector.broadcast %cst_21 : f32 to vector<8x128xf32>
      %c0_22 = arith.constant 0 : index
      %c0_23 = arith.constant 0 : index
      %29 = vector.load %arg7[%c0_22, %c0_23] : memref<8x128xf32, #tpu.memory_space<vmem>>, vector<8x128xf32>
      tpu.vector_store %arg7[%c0_22, %c0_23], %28 {strides = array<i32>} : memref<8x128xf32, #tpu.memory_space<vmem>>, vector<8x128xf32>,
      %cst_24 = arith.constant 0.000000e+00 : f32
      %30 = vector.broadcast %cst_24 : f32 to vector<8x128xf32>
      %c0_25 = arith.constant 0 : index
      %c0_26 = arith.constant 0 : index
      %31 = vector.load %arg8[%c0_25, %c0_26] : memref<8x128xf32, #tpu.memory_space<vmem>>, vector<8x128xf32>
      tpu.vector_store %arg8[%c0_25, %c0_26], %30 {strides = array<i32>} : memref<8x128xf32, #tpu.memory_space<vmem>>, vector<8x128xf32>,
    } else {
    }
    %c0 = arith.constant 0 : index
    %c0_1 = arith.constant 0 : index
    %3 = vector.load %arg4[%c0, %c0_1] : memref<8x128xf32, #tpu.memory_space<vmem>>, vector<8x128xf32>
    %c0_2 = arith.constant 0 : index
    %c0_3 = arith.constant 0 : index
    %4 = vector.load %arg2[%c0_2, %c0_3] : memref<1x128xf32, #tpu.memory_space<vmem>>, vector<1x128xf32>
    %5 = vector.broadcast %4 : vector<1x128xf32> to vector<8x128xf32>
    %6 = arith.mulf %3, %5 : vector<8x128xf32>
    %c0_4 = arith.constant 0 : index
    %c0_5 = arith.constant 0 : index
    %7 = vector.load %arg3[%c0_4, %c0_5] : memref<1x128xf32, #tpu.memory_space<vmem>>, vector<1x128xf32>
    %8 = vector.broadcast %7 : vector<1x128xf32> to vector<8x128xf32>
    %9 = arith.addf %6, %8 : vector<8x128xf32>
    %cst = arith.constant 0.000000e+00 : f32
    %10 = vector.broadcast %cst : f32 to vector<8x128xf32>
    %11 = arith.maximumf %9, %10 : vector<8x128xf32>
    %c0_6 = arith.constant 0 : index
    %c0_7 = arith.constant 0 : index
    %12 = vector.load %arg5[%c0_6, %c0_7] : memref<128x128xf32, #tpu.memory_space<vmem>>, vector<128x128xf32>
    %cst_8 = arith.constant dense<0.000000e+00> : vector<8x128xf32>
    %13 = tpu.matmul %11, %12, %cst_8 {dimension_numbers = #tpu.dot_dimension_numbers<[1], [0], [0], [1], [0, 0, 1, 1], [], []>} : vector<8x128xf32>, vector<128x128xf32>, vector<8x128xf32> -> vector<8x128xf32>
    %c0_9 = arith.constant 0 : index
    %c0_10 = arith.constant 0 : index
    %14 = vector.load %arg7[%c0_9, %c0_10] : memref<8x128xf32, #tpu.memory_space<vmem>>, vector<8x128xf32>
    %cst_11 = arith.constant dense<0.000000e+00> : vector<128xf32>
    %15 = vector.multi_reduction <add>, %13, %cst_11 [0] : vector<8x128xf32> to vector<128xf32>
    %16 = vector.shape_cast %15 : vector<128xf32> to vector<1x128xf32>
    %17 = vector.broadcast %16 : vector<1x128xf32> to vector<8x128xf32>
    %18 = arith.addf %14, %17 : vector<8x128xf32>
    %c0_12 = arith.constant 0 : index
    %c0_13 = arith.constant 0 : index
    %19 = vector.load %arg7[%c0_12, %c0_13] : memref<8x128xf32, #tpu.memory_space<vmem>>, vector<8x128xf32>
    tpu.vector_store %arg7[%c0_12, %c0_13], %18 {strides = array<i32>} : memref<8x128xf32, #tpu.memory_space<vmem>>, vector<8x128xf32>,
    %c0_14 = arith.constant 0 : index
    %c0_15 = arith.constant 0 : index
    %20 = vector.load %arg8[%c0_14, %c0_15] : memref<8x128xf32, #tpu.memory_space<vmem>>, vector<8x128xf32>
    %21 = arith.mulf %13, %13 : vector<8x128xf32>
    %cst_16 = arith.constant dense<0.000000e+00> : vector<128xf32>
    %22 = vector.multi_reduction <add>, %21, %cst_16 [0] : vector<8x128xf32> to vector<128xf32>
    %23 = vector.shape_cast %22 : vector<128xf32> to vector<1x128xf32>
    %24 = vector.broadcast %23 : vector<1x128xf32> to vector<8x128xf32>
    %25 = arith.addf %20, %24 : vector<8x128xf32>
    %c0_17 = arith.constant 0 : index
    %c0_18 = arith.constant 0 : index
    %26 = vector.load %arg8[%c0_17, %c0_18] : memref<8x128xf32, #tpu.memory_space<vmem>>, vector<8x128xf32>
    tpu.vector_store %arg8[%c0_17, %c0_18], %25 {strides = array<i32>} : memref<8x128xf32, #tpu.memory_space<vmem>>, vector<8x128xf32>,
    %c0_19 = arith.constant 0 : index
    %c0_20 = arith.constant 0 : index
    %27 = vector.load %arg6[%c0_19, %c0_20] : memref<8x128xf32, #tpu.memory_space<vmem>>, vector<8x128xf32>
    tpu.vector_store %arg6[%c0_19, %c0_20], %13 {strides = array<i32>} : memref<8x128xf32, #tpu.memory_space<vmem>>, vector<8x128xf32>,
    return
  }
  func.func @transform_0(%arg0: i32, %arg1: i32) -> (i32, i32) {
    %c0_i32 = arith.constant 0 : i32
    %c0_i32_0 = arith.constant 0 : i32
    %c0_i32_1 = arith.constant 0 : i32
    return %c0_i32, %c0_i32_0 : i32, i32
  }
  func.func @transform_1(%arg0: i32, %arg1: i32) -> (i32, i32) {
    %c0_i32 = arith.constant 0 : i32
    %c0_i32_0 = arith.constant 0 : i32
    %c0_i32_1 = arith.constant 0 : i32
    return %c0_i32, %c0_i32_0 : i32, i32
  }
  func.func @transform_2(%arg0: i32, %arg1: i32) -> (i32, i32) {
    %c1_i32 = arith.constant 1 : i32
    %0 = arith.muli %arg0, %c1_i32 : i32
    %1 = arith.addi %0, %arg1 : i32
    %c0_i32 = arith.constant 0 : i32
    %c0_i32_0 = arith.constant 0 : i32
    return %1, %c0_i32 : i32, i32
  }
  func.func @transform_3(%arg0: i32, %arg1: i32) -> (i32, i32) {
    %c0_i32 = arith.constant 0 : i32
    %c0_i32_0 = arith.constant 0 : i32
    %c0_i32_1 = arith.constant 0 : i32
    return %c0_i32, %c0_i32_0 : i32, i32
  }
  func.func @transform_4(%arg0: i32, %arg1: i32) -> (i32, i32) {
    %c1_i32 = arith.constant 1 : i32
    %0 = arith.muli %arg0, %c1_i32 : i32
    %1 = arith.addi %0, %arg1 : i32
    %c0_i32 = arith.constant 0 : i32
    %c0_i32_0 = arith.constant 0 : i32
    return %1, %c0_i32 : i32, i32
  }
  func.func @transform_5(%arg0: i32, %arg1: i32) -> (i32, i32) {
    %c0_i32 = arith.constant 0 : i32
    %c0_i32_0 = arith.constant 0 : i32
    return %arg0, %c0_i32 : i32, i32
  }
  func.func @transform_6(%arg0: i32, %arg1: i32) -> (i32, i32) {
    %c0_i32 = arith.constant 0 : i32
    %c0_i32_0 = arith.constant 0 : i32
    return %arg0, %c0_i32 : i32, i32
  }
}

module attributes {stable_mosaic.version = 11 : i64} {
  func.func @_bn_relu_kernel(%arg0: i32, %arg1: memref<1x128xf32, #tpu.memory_space<vmem>>, %arg2: memref<1x128xf32, #tpu.memory_space<vmem>>, %arg3: memref<8x128xf32, #tpu.memory_space<vmem>>, %arg4: memref<8x128xf32, #tpu.memory_space<vmem>>) attributes {dimension_semantics = [#tpu.dimension_semantics<parallel>], iteration_bounds = array<i64: 1>, scalar_prefetch = 0 : i64, scratch_operands = 0 : i64, tpu.core_type = #tpu.core_type<tc>, window_params = [{pipeline_mode = #tpu.pipeline_mode<synchronous>, transform_indices = @transform_0, window_bounds = array<i64: 1, 128>}, {pipeline_mode = #tpu.pipeline_mode<synchronous>, transform_indices = @transform_1, window_bounds = array<i64: 1, 128>}, {transform_indices = @transform_2, window_bounds = array<i64: 8, 128>}, {transform_indices = @transform_3, window_bounds = array<i64: 8, 128>}]} {
    %c0 = arith.constant 0 : index
    %c0_0 = arith.constant 0 : index
    %0 = vector.load %arg3[%c0, %c0_0] : memref<8x128xf32, #tpu.memory_space<vmem>>, vector<8x128xf32>
    %c0_1 = arith.constant 0 : index
    %c0_2 = arith.constant 0 : index
    %1 = vector.load %arg1[%c0_1, %c0_2] : memref<1x128xf32, #tpu.memory_space<vmem>>, vector<1x128xf32>
    %2 = vector.broadcast %1 : vector<1x128xf32> to vector<8x128xf32>
    %3 = arith.mulf %0, %2 : vector<8x128xf32>
    %c0_3 = arith.constant 0 : index
    %c0_4 = arith.constant 0 : index
    %4 = vector.load %arg2[%c0_3, %c0_4] : memref<1x128xf32, #tpu.memory_space<vmem>>, vector<1x128xf32>
    %5 = vector.broadcast %4 : vector<1x128xf32> to vector<8x128xf32>
    %6 = arith.addf %3, %5 : vector<8x128xf32>
    %cst = arith.constant 0.000000e+00 : f32
    %7 = vector.broadcast %cst : f32 to vector<8x128xf32>
    %8 = arith.maximumf %6, %7 : vector<8x128xf32>
    %c0_5 = arith.constant 0 : index
    %c0_6 = arith.constant 0 : index
    %9 = vector.load %arg4[%c0_5, %c0_6] : memref<8x128xf32, #tpu.memory_space<vmem>>, vector<8x128xf32>
    tpu.vector_store %arg4[%c0_5, %c0_6], %8 {strides = array<i32>} : memref<8x128xf32, #tpu.memory_space<vmem>>, vector<8x128xf32>,
    return
  }
  func.func @transform_0(%arg0: i32) -> (i32, i32) {
    %c0_i32 = arith.constant 0 : i32
    %c0_i32_0 = arith.constant 0 : i32
    %c0_i32_1 = arith.constant 0 : i32
    return %c0_i32, %c0_i32_0 : i32, i32
  }
  func.func @transform_1(%arg0: i32) -> (i32, i32) {
    %c0_i32 = arith.constant 0 : i32
    %c0_i32_0 = arith.constant 0 : i32
    %c0_i32_1 = arith.constant 0 : i32
    return %c0_i32, %c0_i32_0 : i32, i32
  }
  func.func @transform_2(%arg0: i32) -> (i32, i32) {
    %c0_i32 = arith.constant 0 : i32
    %c0_i32_0 = arith.constant 0 : i32
    return %arg0, %c0_i32 : i32, i32
  }
  func.func @transform_3(%arg0: i32) -> (i32, i32) {
    %c0_i32 = arith.constant 0 : i32
    %c0_i32_0 = arith.constant 0 : i32
    return %arg0, %c0_i32 : i32, i32
  }
}

module attributes {stable_mosaic.version = 11 : i64} {
  func.func @_linear_stats_kernel(%arg0: i32, %arg1: i32, %arg2: memref<8x128xf32, #tpu.memory_space<vmem>>, %arg3: memref<128x128xf32, #tpu.memory_space<vmem>>, %arg4: memref<8x128xf32, #tpu.memory_space<vmem>>, %arg5: memref<8x128xf32, #tpu.memory_space<vmem>>, %arg6: memref<8x128xf32, #tpu.memory_space<vmem>>) attributes {dimension_semantics = [#tpu.dimension_semantics<parallel>, #tpu.dimension_semantics<arbitrary>], iteration_bounds = array<i64: 1, 1>, scalar_prefetch = 0 : i64, scratch_operands = 0 : i64, tpu.core_type = #tpu.core_type<tc>, window_params = [{transform_indices = @transform_0, window_bounds = array<i64: 8, 128>}, {pipeline_mode = #tpu.pipeline_mode<synchronous>, transform_indices = @transform_1, window_bounds = array<i64: 128, 128>}, {transform_indices = @transform_2, window_bounds = array<i64: 8, 128>}, {transform_indices = @transform_3, window_bounds = array<i64: 8, 128>}, {transform_indices = @transform_4, window_bounds = array<i64: 8, 128>}]} {
    %c0_i32 = arith.constant 0 : i32
    %0 = arith.cmpi eq, %arg1, %c0_i32 : i32
    %1 = arith.extui %0 : i1 to i32
    %c0_i32_0 = arith.constant 0 : i32
    %2 = arith.cmpi ne, %1, %c0_i32_0 : i32
    scf.if %2 {
      %cst_16 = arith.constant 0.000000e+00 : f32
      %20 = vector.broadcast %cst_16 : f32 to vector<8x128xf32>
      %c0_17 = arith.constant 0 : index
      %c0_18 = arith.constant 0 : index
      %21 = vector.load %arg5[%c0_17, %c0_18] : memref<8x128xf32, #tpu.memory_space<vmem>>, vector<8x128xf32>
      tpu.vector_store %arg5[%c0_17, %c0_18], %20 {strides = array<i32>} : memref<8x128xf32, #tpu.memory_space<vmem>>, vector<8x128xf32>,
      %cst_19 = arith.constant 0.000000e+00 : f32
      %22 = vector.broadcast %cst_19 : f32 to vector<8x128xf32>
      %c0_20 = arith.constant 0 : index
      %c0_21 = arith.constant 0 : index
      %23 = vector.load %arg6[%c0_20, %c0_21] : memref<8x128xf32, #tpu.memory_space<vmem>>, vector<8x128xf32>
      tpu.vector_store %arg6[%c0_20, %c0_21], %22 {strides = array<i32>} : memref<8x128xf32, #tpu.memory_space<vmem>>, vector<8x128xf32>,
    } else {
    }
    %c0 = arith.constant 0 : index
    %c0_1 = arith.constant 0 : index
    %3 = vector.load %arg2[%c0, %c0_1] : memref<8x128xf32, #tpu.memory_space<vmem>>, vector<8x128xf32>
    %c0_2 = arith.constant 0 : index
    %c0_3 = arith.constant 0 : index
    %4 = vector.load %arg3[%c0_2, %c0_3] : memref<128x128xf32, #tpu.memory_space<vmem>>, vector<128x128xf32>
    %cst = arith.constant dense<0.000000e+00> : vector<8x128xf32>
    %5 = tpu.matmul %3, %4, %cst {dimension_numbers = #tpu.dot_dimension_numbers<[1], [0], [0], [1], [0, 0, 1, 1], [], []>} : vector<8x128xf32>, vector<128x128xf32>, vector<8x128xf32> -> vector<8x128xf32>
    %c0_4 = arith.constant 0 : index
    %c0_5 = arith.constant 0 : index
    %6 = vector.load %arg5[%c0_4, %c0_5] : memref<8x128xf32, #tpu.memory_space<vmem>>, vector<8x128xf32>
    %cst_6 = arith.constant dense<0.000000e+00> : vector<128xf32>
    %7 = vector.multi_reduction <add>, %5, %cst_6 [0] : vector<8x128xf32> to vector<128xf32>
    %8 = vector.shape_cast %7 : vector<128xf32> to vector<1x128xf32>
    %9 = vector.broadcast %8 : vector<1x128xf32> to vector<8x128xf32>
    %10 = arith.addf %6, %9 : vector<8x128xf32>
    %c0_7 = arith.constant 0 : index
    %c0_8 = arith.constant 0 : index
    %11 = vector.load %arg5[%c0_7, %c0_8] : memref<8x128xf32, #tpu.memory_space<vmem>>, vector<8x128xf32>
    tpu.vector_store %arg5[%c0_7, %c0_8], %10 {strides = array<i32>} : memref<8x128xf32, #tpu.memory_space<vmem>>, vector<8x128xf32>,
    %c0_9 = arith.constant 0 : index
    %c0_10 = arith.constant 0 : index
    %12 = vector.load %arg6[%c0_9, %c0_10] : memref<8x128xf32, #tpu.memory_space<vmem>>, vector<8x128xf32>
    %13 = arith.mulf %5, %5 : vector<8x128xf32>
    %cst_11 = arith.constant dense<0.000000e+00> : vector<128xf32>
    %14 = vector.multi_reduction <add>, %13, %cst_11 [0] : vector<8x128xf32> to vector<128xf32>
    %15 = vector.shape_cast %14 : vector<128xf32> to vector<1x128xf32>
    %16 = vector.broadcast %15 : vector<1x128xf32> to vector<8x128xf32>
    %17 = arith.addf %12, %16 : vector<8x128xf32>
    %c0_12 = arith.constant 0 : index
    %c0_13 = arith.constant 0 : index
    %18 = vector.load %arg6[%c0_12, %c0_13] : memref<8x128xf32, #tpu.memory_space<vmem>>, vector<8x128xf32>
    tpu.vector_store %arg6[%c0_12, %c0_13], %17 {strides = array<i32>} : memref<8x128xf32, #tpu.memory_space<vmem>>, vector<8x128xf32>,
    %c0_14 = arith.constant 0 : index
    %c0_15 = arith.constant 0 : index
    %19 = vector.load %arg4[%c0_14, %c0_15] : memref<8x128xf32, #tpu.memory_space<vmem>>, vector<8x128xf32>
    tpu.vector_store %arg4[%c0_14, %c0_15], %5 {strides = array<i32>} : memref<8x128xf32, #tpu.memory_space<vmem>>, vector<8x128xf32>,
    return
  }
  func.func @transform_0(%arg0: i32, %arg1: i32) -> (i32, i32) {
    %c1_i32 = arith.constant 1 : i32
    %0 = arith.muli %arg0, %c1_i32 : i32
    %1 = arith.addi %0, %arg1 : i32
    %c0_i32 = arith.constant 0 : i32
    %c0_i32_0 = arith.constant 0 : i32
    return %1, %c0_i32 : i32, i32
  }
  func.func @transform_1(%arg0: i32, %arg1: i32) -> (i32, i32) {
    %c0_i32 = arith.constant 0 : i32
    %c0_i32_0 = arith.constant 0 : i32
    %c0_i32_1 = arith.constant 0 : i32
    return %c0_i32, %c0_i32_0 : i32, i32
  }
  func.func @transform_2(%arg0: i32, %arg1: i32) -> (i32, i32) {
    %c1_i32 = arith.constant 1 : i32
    %0 = arith.muli %arg0, %c1_i32 : i32
    %1 = arith.addi %0, %arg1 : i32
    %c0_i32 = arith.constant 0 : i32
    %c0_i32_0 = arith.constant 0 : i32
    return %1, %c0_i32 : i32, i32
  }
  func.func @transform_3(%arg0: i32, %arg1: i32) -> (i32, i32) {
    %c0_i32 = arith.constant 0 : i32
    %c0_i32_0 = arith.constant 0 : i32
    return %arg0, %c0_i32 : i32, i32
  }
  func.func @transform_4(%arg0: i32, %arg1: i32) -> (i32, i32) {
    %c0_i32 = arith.constant 0 : i32
    %c0_i32_0 = arith.constant 0 : i32
    return %arg0, %c0_i32 : i32, i32
  }
}

</mosaic_0001>

<bundles_post_ra>
// kernel: mlp_forward.4
= control target key start
LH: loop header
LB: loop body
LE: loop exit
PB: predicated region body
PF: predicated region fallthrough
CT: control target
= control target key end

     0   :  { %v271_v0 = vmov 0.0   ;;  %vm272_vm0 = vmmov 0   ;;  %s374_s3 = inlined_call_operand.vmem [shape: f32[128,128], index: 3, kind: input, shape index: {}]   ;;  %s375_s0 = inlined_call_operand.vmem [shape: f32[1,128], index: 0, kind: input, shape index: {}]   ;;  %s376_s2 = inlined_call_operand.vmem [shape: f32[8,128], index: 2, kind: input, shape index: {}]   ;;  %s377_s1 = inlined_call_operand.vmem [shape: f32[1,128], index: 1, kind: input, shape index: {}]   ;;  %s378_s4 = inlined_call_operand.vmem [shape: f32[8,128], index: 4, kind: output, shape index: {0}]   ;;  %s379_s5 = inlined_call_operand.vmem [shape: f32[8,128], index: 5, kind: output, shape index: {1}]   ;;  %s380_s6 = inlined_call_operand.vmem [shape: f32[8,128], index: 6, kind: output, shape index: {2}]  }
   0x1   :  { %234 = vmatprep.subr.mxu0 %v271_v0  ;;  %v87_v1 = vld [vmem:[%s374_s3 + $0x78] sm:$0xff]  ;;  %v86_v2 = vld [vmem:[%s374_s3 + $0x70] sm:$0xff]  ;;  %266 = vmatprep.mubr.msk.f32.mxu0 %vm272_vm0, %v271_v0  ;;  %v85_v3 = vld [vmem:[%s374_s3 + $0x68] sm:$0xff] }
   0x2   :  { %235 = vmatpush3.msra.mxu0 %v87_v1  ;;  %v84_v4 = vld [vmem:[%s374_s3 + $0x60] sm:$0xff]  ;;  %v83_v5 = vld [vmem:[%s374_s3 + $0x58] sm:$0xff]  ;;  %v82_v6 = vld [vmem:[%s374_s3 + $0x50] sm:$0xff] }
   0x3   :  { %236 = vmatprep.subr.mxu0 %v271_v0  ;;  %v81_v7 = vld [vmem:[%s374_s3 + $0x48] sm:$0xff]  ;;  %v80_v8 = vld [vmem:[%s374_s3 + $0x40] sm:$0xff]  ;;  %v79_v9 = vld [vmem:[%s374_s3 + $0x38] sm:$0xff] }
   0x4   :  { %237 = vmatpush3.msra.mxu0 %v86_v2  ;;  %v78_v10 = vld [vmem:[%s374_s3 + $0x30] sm:$0xff]  ;;  %v54_v11 = vld [vmem:[%s376_s2] sm:$0xff]  ;;  %v77_v13 = vld [vmem:[%s374_s3 + $0x28] sm:$0xff] }
   0x5   :  { %238 = vmatprep.subr.mxu0 %v271_v0  ;;  %v215_v12 = vld [vmem:[%s375_s0] ss:$0 sm:$0xff]  ;;  %v75_v17 = vld [vmem:[%s374_s3 + $0x18] sm:$0xff]  ;;  %v74_v18 = vld [vmem:[%s374_s3 + $0x10] sm:$0xff] }
   0x6   :  { %239 = vmatpush3.msra.mxu0 %v85_v3  ;;  %v76_v14 = vld [vmem:[%s374_s3 + $0x20] sm:$0xff]  ;;  %v62_v15 = vmul.f32 %v215_v12, %v54_v11  ;;  %v73_v20 = vld [vmem:[%s374_s3 + $0x8] sm:$0xff] }
   0x7   :  { %240 = vmatprep.subr.mxu0 %v271_v0  ;;  %v216_v16 = vld [vmem:[%s377_s1] ss:$0 sm:$0xff] }
   0x8   :  { %241 = vmatpush3.msra.mxu0 %v84_v4  ;;  %v70_v19 = vadd.f32 %v216_v16, %v62_v15  ;;  %v72_v21 = vld [vmem:[%s374_s3] sm:$0xff] }
   0x9   :  { %242 = vmatprep.subr.mxu0 %v271_v0 }
   0xa   :  { %243 = vmatpush3.msra.mxu0 %v83_v5  ;;  %v71_v22 = vmax.f32 %v70_v19, 0.0 }
   0xb   :  { %244 = vmatprep.subr.mxu0 %v271_v0 }
   0xc   :  { %245 = vmatpush3.msra.mxu0 %v82_v6 }
   0xd   :  { %246 = vmatprep.subr.mxu0 %v271_v0 }
   0xe   :  { %247 = vmatpush3.msra.mxu0 %v81_v7 }
   0xf   :  { %248 = vmatprep.subr.mxu0 %v271_v0 }
  0x10   :  { %249 = vmatpush3.msra.mxu0 %v80_v8 }
  0x11   :  { %250 = vmatprep.subr.mxu0 %v271_v0 }
  0x12   :  { %251 = vmatpush3.msra.mxu0 %v79_v9 }
  0x13   :  { %252 = vmatprep.subr.mxu0 %v271_v0 }
  0x14   :  { %253 = vmatpush3.msra.mxu0 %v78_v10 }
  0x15   :  { %254 = vmatprep.subr.mxu0 %v271_v0 }
  0x16   :  { %255 = vmatpush3.msra.mxu0 %v77_v13 }
  0x17   :  { %256 = vmatprep.subr.mxu0 %v271_v0 }
  0x18   :  { %257 = vmatpush3.msra.mxu0 %v76_v14 }
  0x19   :  { %258 = vmatprep.subr.mxu0 %v271_v0 }
  0x1a   :  { %259 = vmatpush3.msra.mxu0 %v75_v17 }
  0x1b   :  { %260 = vmatprep.subr.mxu0 %v271_v0 }
  0x1c   :  { %261 = vmatpush3.msra.mxu0 %v74_v18 }
  0x1d   :  { %262 = vmatprep.subr.mxu0 %v271_v0 }
  0x1e   :  { %263 = vmatpush3.msra.mxu0 %v73_v20 }
  0x1f   :  { %264 = vmatprep.subr.mxu0 %v271_v0 }
  0x20   :  { %265 = vmatpush3.msra.mxu0 %v72_v21 }
  0x21   :  { %267 = vmatmul.mubr.f32.vlgmr.msra.gmra.mxu0 %v71_v22 }
  0xe1   :  { %v154_v23 = vpop.f32.mrf.mxu0 }
  0xe2   :  { %v159_v24 = vrot.slane %v154_v23, 4  ;;  %v168_v25 = vmul.f32 %v154_v23, %v154_v23  ;;  %177 = vst [vmem:[%s378_s4] sm:$0xff] %v154_v23 }
  0xe3   :  { %v268_v26 = vpop.f32.mrf.mxu0 }
  0xe4   :  { %v160_v27 = vadd.f32 %v159_v24, %v154_v23  ;;  %v169_v28 = vrot.slane %v168_v25, 4 }
  0xe6   :  { %v161_v29 = vrot.slane %v160_v27, 2  ;;  %v170_v30 = vadd.f32 %v169_v28, %v168_v25 }
  0xe8   :  { %v162_v31 = vadd.f32 %v161_v29, %v160_v27  ;;  %v171_v32 = vrot.slane %v170_v30, 2 }
  0xea   :  { %v163_v33 = vrot.slane %v162_v31, 1  ;;  %v172_v34 = vadd.f32 %v171_v32, %v170_v30 }
  0xec   :  { %v164_v35 = vadd.f32 %v163_v33, %v162_v31  ;;  %v173_v36 = vrot.slane %v172_v34, 1 }
  0xee   :  { %v174_v37 = vadd.f32 %v173_v36, %v172_v34  ;;  %166 = vst [vmem:[%s379_s5] sm:$0xff] %v164_v35 }
  0xf0   :  { %176 = vst [vmem:[%s380_s6] sm:$0xff] %v174_v37 }

// kernel: mlp_forward.5
= control target key start
LH: loop header
LB: loop body
LE: loop exit
PB: predicated region body
PF: predicated region fallthrough
CT: control target
= control target key end

     0   :  { %s71_s0 = inlined_call_operand.vmem [shape: f32[1,128], index: 0, kind: input, shape index: {}]   ;;  %s72_s1 = inlined_call_operand.vmem [shape: f32[1,128], index: 1, kind: input, shape index: {}]   ;;  %s73_s2 = inlined_call_operand.vmem [shape: f32[8,128], index: 2, kind: input, shape index: {}, may-alias: {2,3}]   ;;  %s74_s3 = inlined_call_operand.vmem [shape: f32[8,128], index: 3, kind: output, shape index: {}, may-alias: {2,3}]  }
   0x1   :  { %v14_v0 = vld [vmem:[%s73_s2] sm:$0xff] }
   0x2   :  { %v37_v1 = vld [vmem:[%s71_s0] ss:$0 sm:$0xff] }
   0x3   :  { %v38_v2 = vld [vmem:[%s72_s1] ss:$0 sm:$0xff]  ;;  %v22_v3 = vmul.f32 %v37_v1, %v14_v0 }
   0x5   :  { %v30_v4 = vadd.f32 %v38_v2, %v22_v3 }
   0x7   :  { %v31_v5 = vmax.f32 %v30_v4, 0.0 }
   0x9   :  { %32 = vst [vmem:[%s74_s3] sm:$0xff] %v31_v5 }

// kernel: mlp_forward.3
= control target key start
LH: loop header
LB: loop body
LE: loop exit
PB: predicated region body
PF: predicated region fallthrough
CT: control target
= control target key end

     0   :  { %v246_v0 = vmov 0.0   ;;  %vm247_vm0 = vmmov 0   ;;  %s333_s1 = inlined_call_operand.vmem [shape: f32[128,128], index: 1, kind: input, shape index: {}]   ;;  %s334_s0 = inlined_call_operand.vmem [shape: f32[8,128], index: 0, kind: input, shape index: {}]   ;;  %s335_s2 = inlined_call_operand.vmem [shape: f32[8,128], index: 2, kind: output, shape index: {0}]   ;;  %s336_s3 = inlined_call_operand.vmem [shape: f32[8,128], index: 3, kind: output, shape index: {1}]   ;;  %s337_s4 = inlined_call_operand.vmem [shape: f32[8,128], index: 4, kind: output, shape index: {2}]  }
   0x1   :  { %209 = vmatprep.subr.mxu0 %v246_v0  ;;  %v64_v1 = vld [vmem:[%s333_s1 + $0x78] sm:$0xff]  ;;  %v63_v2 = vld [vmem:[%s333_s1 + $0x70] sm:$0xff]  ;;  %241 = vmatprep.mubr.msk.f32.mxu0 %vm247_vm0, %v246_v0  ;;  %v62_v3 = vld [vmem:[%s333_s1 + $0x68] sm:$0xff] }
   0x2   :  { %210 = vmatpush3.msra.mxu0 %v64_v1  ;;  %v61_v4 = vld [vmem:[%s333_s1 + $0x60] sm:$0xff]  ;;  %v60_v5 = vld [vmem:[%s333_s1 + $0x58] sm:$0xff]  ;;  %v59_v6 = vld [vmem:[%s333_s1 + $0x50] sm:$0xff] }
   0x3   :  { %211 = vmatprep.subr.mxu0 %v246_v0  ;;  %v58_v7 = vld [vmem:[%s333_s1 + $0x48] sm:$0xff]  ;;  %v57_v8 = vld [vmem:[%s333_s1 + $0x40] sm:$0xff]  ;;  %v56_v9 = vld [vmem:[%s333_s1 + $0x38] sm:$0xff] }
   0x4   :  { %212 = vmatpush3.msra.mxu0 %v63_v2  ;;  %v55_v10 = vld [vmem:[%s333_s1 + $0x30] sm:$0xff]  ;;  %v54_v11 = vld [vmem:[%s333_s1 + $0x28] sm:$0xff]  ;;  %v53_v12 = vld [vmem:[%s333_s1 + $0x20] sm:$0xff] }
   0x5   :  { %213 = vmatprep.subr.mxu0 %v246_v0  ;;  %v52_v13 = vld [vmem:[%s333_s1 + $0x18] sm:$0xff]  ;;  %v51_v14 = vld [vmem:[%s333_s1 + $0x10] sm:$0xff]  ;;  %v50_v15 = vld [vmem:[%s333_s1 + $0x8] sm:$0xff] }
   0x6   :  { %214 = vmatpush3.msra.mxu0 %v62_v3  ;;  %v49_v16 = vld [vmem:[%s333_s1] sm:$0xff] }
   0x7   :  { %215 = vmatprep.subr.mxu0 %v246_v0  ;;  %v48_v17 = vld [vmem:[%s334_s0] sm:$0xff] }
   0x8   :  { %216 = vmatpush3.msra.mxu0 %v61_v4 }
   0x9   :  { %217 = vmatprep.subr.mxu0 %v246_v0 }
   0xa   :  { %218 = vmatpush3.msra.mxu0 %v60_v5 }
   0xb   :  { %219 = vmatprep.subr.mxu0 %v246_v0 }
   0xc   :  { %220 = vmatpush3.msra.mxu0 %v59_v6 }
   0xd   :  { %221 = vmatprep.subr.mxu0 %v246_v0 }
   0xe   :  { %222 = vmatpush3.msra.mxu0 %v58_v7 }
   0xf   :  { %223 = vmatprep.subr.mxu0 %v246_v0 }
  0x10   :  { %224 = vmatpush3.msra.mxu0 %v57_v8 }
  0x11   :  { %225 = vmatprep.subr.mxu0 %v246_v0 }
  0x12   :  { %226 = vmatpush3.msra.mxu0 %v56_v9 }
  0x13   :  { %227 = vmatprep.subr.mxu0 %v246_v0 }
  0x14   :  { %228 = vmatpush3.msra.mxu0 %v55_v10 }
  0x15   :  { %229 = vmatprep.subr.mxu0 %v246_v0 }
  0x16   :  { %230 = vmatpush3.msra.mxu0 %v54_v11 }
  0x17   :  { %231 = vmatprep.subr.mxu0 %v246_v0 }
  0x18   :  { %232 = vmatpush3.msra.mxu0 %v53_v12 }
  0x19   :  { %233 = vmatprep.subr.mxu0 %v246_v0 }
  0x1a   :  { %234 = vmatpush3.msra.mxu0 %v52_v13 }
  0x1b   :  { %235 = vmatprep.subr.mxu0 %v246_v0 }
  0x1c   :  { %236 = vmatpush3.msra.mxu0 %v51_v14 }
  0x1d   :  { %237 = vmatprep.subr.mxu0 %v246_v0 }
  0x1e   :  { %238 = vmatpush3.msra.mxu0 %v50_v15 }
  0x1f   :  { %239 = vmatprep.subr.mxu0 %v246_v0 }
  0x20   :  { %240 = vmatpush3.msra.mxu0 %v49_v16 }
  0x21   :  { %242 = vmatmul.mubr.f32.vlgmr.msra.gmra.mxu0 %v48_v17 }
  0xe1   :  { %v131_v18 = vpop.f32.mrf.mxu0 }
  0xe2   :  { %v136_v19 = vrot.slane %v131_v18, 4  ;;  %v145_v20 = vmul.f32 %v131_v18, %v131_v18  ;;  %154 = vst [vmem:[%s335_s2] sm:$0xff] %v131_v18 }
  0xe3   :  { %v243_v21 = vpop.f32.mrf.mxu0 }
  0xe4   :  { %v137_v22 = vadd.f32 %v136_v19, %v131_v18  ;;  %v146_v23 = vrot.slane %v145_v20, 4 }
  0xe6   :  { %v138_v24 = vrot.slane %v137_v22, 2  ;;  %v147_v25 = vadd.f32 %v146_v23, %v145_v20 }
  0xe8   :  { %v139_v26 = vadd.f32 %v138_v24, %v137_v22  ;;  %v148_v27 = vrot.slane %v147_v25, 2 }
  0xea   :  { %v140_v28 = vrot.slane %v139_v26, 1  ;;  %v149_v29 = vadd.f32 %v148_v27, %v147_v25 }
  0xec   :  { %v141_v30 = vadd.f32 %v140_v28, %v139_v26  ;;  %v150_v31 = vrot.slane %v149_v29, 1 }
  0xee   :  { %v151_v32 = vadd.f32 %v150_v31, %v149_v29  ;;  %143 = vst [vmem:[%s336_s3] sm:$0xff] %v141_v30 }
  0xf0   :  { %153 = vst [vmem:[%s337_s4] sm:$0xff] %v151_v32 }

</bundles_post_ra>
